<compile_context>
chip_gen: v7x
topology: tpu7x:2x2x1
jax: 0.10.0
libtpu: 0.0.40
codegen_flags: <defaults>
</compile_context>

<pallas_src>
import functools

import jax
import jax.numpy as jnp
from jax.experimental import pallas as pl
from jax.experimental.pallas import tpu as pltpu

LANES = 128
SUBLANES = 8


def gina_kernel(x_ref, w1_ref, b1_ref, w2_ref, b2_ref, out_ref):
    # x_ref  : (S, TBR, 128)  VMEM   -- batch dense on (sublane, lane)
    # w1_ref : (H, S)         SMEM   (torch layout: out x in)
    # b1_ref : (H,)           SMEM
    # w2_ref : (A, H)         SMEM
    # b2_ref : (A,)           SMEM
    # out_ref: (A, TBR, 128)  VMEM
    S = x_ref.shape[0]
    H = b1_ref.shape[0]
    A = out_ref.shape[0]

    # Load the S feature slabs once; each is a dense (TBR, 128) f32 tile.
    x = [x_ref[k] for k in range(S)]

    # fc1 + ReLU, unrolled as VPU FMAs; bias seeds each accumulator.
    h = []
    for j in range(H):
        acc = x[0] * w1_ref[j, 0] + b1_ref[j]
        for k in range(1, S):
            acc = acc + x[k] * w1_ref[j, k]
        h.append(jnp.maximum(acc, 0.0))

    # fc2, unrolled as VPU FMAs; bias seeds each accumulator.
    logits = []
    for a in range(A):
        acc = h[0] * w2_ref[a, 0] + b2_ref[a]
        for j in range(1, H):
            acc = acc + h[j] * w2_ref[a, j]
        logits.append(acc)

    # Numerically stable softmax over the A action slabs, fully unrolled
    # (pure VPU max/add over dense vregs; no cross-lane reduction).
    m = logits[0]
    for a in range(1, A):
        m = jnp.maximum(m, logits[a])
    exps = [jnp.exp(l - m) for l in logits]
    denom = exps[0]
    for a in range(1, A):
        denom = denom + exps[a]
    inv = pl.reciprocal(denom, approx=True)  # EUP vrcp; ~1e-3-level rel. error
    for a in range(A):
        out_ref[a] = exps[a] * inv


def _round_up(n, m):
    return -(-n // m) * m


@functools.partial(jax.jit, static_argnames=("block_rows",))
def gina_forward(x, w1, b1, w2, b2, *, block_rows=256):
    """x: (B, 2) f32; w1: (6, 2); b1: (6,); w2: (3, 6); b2: (3,) -> (B, 3) probs."""
    B, S = x.shape
    H, S2 = w1.shape
    A, H2 = w2.shape
    assert S2 == S and H2 == H and b1.shape == (H,) and b2.shape == (A,)

    # Lay batch out dense on (sublane, lane): [B, S] -> [S, BR_pad, 128].
    BR = _round_up(B, LANES) // LANES                 # 128-wide batch rows
    tbr = min(block_rows, _round_up(BR, SUBLANES))    # batch-row tile (mult of 8)
    BR_pad = _round_up(BR, tbr)
    B_pad = BR_pad * LANES

    x_t = jnp.transpose(x)                            # (S, B)
    x_t = jnp.pad(x_t, ((0, 0), (0, B_pad - B)))      # zero-pad batch
    x_t = x_t.reshape(S, BR_pad, LANES)

    grid = (BR_pad // tbr,)

    smem_spec = pl.BlockSpec(memory_space=pltpu.MemorySpace.SMEM)

    out = pl.pallas_call(
        gina_kernel,
        out_shape=jax.ShapeDtypeStruct((A, BR_pad, LANES), jnp.float32),
        grid=grid,
        in_specs=[
            pl.BlockSpec((S, tbr, LANES), lambda i: (0, i, 0)),  # batch-tiled x
            smem_spec,  # w1  (tiny, resident across grid steps)
            smem_spec,  # b1
            smem_spec,  # w2
            smem_spec,  # b2
        ],
        out_specs=pl.BlockSpec((A, tbr, LANES), lambda i: (0, i, 0)),
        compiler_params=pltpu.CompilerParams(
            dimension_semantics=("parallel",),  # shard batch tiles across TCs (v7x)
        ),
    )(x_t, w1, b1, w2, b2)

    # [A, BR_pad, 128] -> [A, B_pad] -> (B, A)
    return out.reshape(A, B_pad)[:, :B].T


def init_params(key, s_size=2, h_size=6, a_size=3):
    """Deterministic synthetic init (PyTorch-like uniform fan-in bounds),
    stored in the torch Linear layout: weight = (out_features, in_features)."""
    k1, k2, k3, k4 = jax.random.split(key, 4)
    bound1 = 1.0 / jnp.sqrt(jnp.float32(s_size))
    bound2 = 1.0 / jnp.sqrt(jnp.float32(h_size))
    w1 = jax.random.uniform(k1, (h_size, s_size), jnp.float32, -bound1, bound1)
    b1 = jax.random.uniform(k2, (h_size,), jnp.float32, -bound1, bound1)
    w2 = jax.random.uniform(k3, (a_size, h_size), jnp.float32, -bound2, bound2)
    b2 = jax.random.uniform(k4, (a_size,), jnp.float32, -bound2, bound2)
    return w1, b1, w2, b2


def reference_forward(x, w1, b1, w2, b2):
    h = jnp.maximum(x @ w1.T + b1, 0.0)
    logits = h @ w2.T + b2
    return jax.nn.softmax(logits, axis=1)


if __name__ == "__main__":
    key = jax.random.PRNGKey(0)
    k_params, k_x = jax.random.split(key)

    w1, b1, w2, b2 = init_params(k_params)

    batch = 8
    x = jax.random.normal(k_x, (batch, 2), jnp.float32)

    probs = gina_forward(x, w1, b1, w2, b2)
    probs = jax.block_until_ready(probs)

    ref = reference_forward(x, w1, b1, w2, b2)
    assert probs.shape == (batch, 3)
    # approx reciprocal in the softmax normalization -> ~1e-3-level tolerance
    assert jnp.allclose(probs, ref, atol=2e-3, rtol=2e-3)
    # rows sum to ~1 (softmax)
    assert jnp.allclose(jnp.sum(probs, axis=1), jnp.ones((batch,)), atol=3e-3)

    # TODO(synk): Categorical sampling / log_prob from `act()` is host-side
    # torch.distributions logic, left to the caller (use jax.random.categorical).
    print("KERNEL_OK")
</pallas_src>

<mosaic_0001>
module attributes {stable_mosaic.version = 11 : i64} {
  func.func @gina_kernel(%arg0: i32, %arg1: memref<2x8x128xf32, #tpu.memory_space<vmem>>, %arg2: memref<6x2xf32, #tpu.memory_space<smem>>, %arg3: memref<6xf32, #tpu.memory_space<smem>>, %arg4: memref<3x6xf32, #tpu.memory_space<smem>>, %arg5: memref<3xf32, #tpu.memory_space<smem>>, %arg6: memref<3x8x128xf32, #tpu.memory_space<vmem>>) attributes {dimension_semantics = [#tpu.dimension_semantics<parallel>], iteration_bounds = array<i64: 1>, scalar_prefetch = 0 : i64, scratch_operands = 0 : i64, tpu.core_type = #tpu.core_type<tc>, window_params = [{transform_indices = @transform_0, window_bounds = array<i64: 2, 8, 128>}, {transform_indices = @transform_1, window_bounds = array<i64: 6, 2>}, {transform_indices = @transform_2, window_bounds = array<i64: 6>}, {transform_indices = @transform_3, window_bounds = array<i64: 3, 6>}, {transform_indices = @transform_4, window_bounds = array<i64: 3>}, {transform_indices = @transform_5, window_bounds = array<i64: 3, 8, 128>}]} {
    %c0 = arith.constant 0 : index
    %c0_0 = arith.constant 0 : index
    %c0_1 = arith.constant 0 : index
    %0 = vector.load %arg1[%c0, %c0_0, %c0_1] : memref<2x8x128xf32, #tpu.memory_space<vmem>>, vector<1x8x128xf32>
    %1 = vector.shape_cast %0 : vector<1x8x128xf32> to vector<8x128xf32>
    %c1 = arith.constant 1 : index
    %c0_2 = arith.constant 0 : index
    %c0_3 = arith.constant 0 : index
    %2 = vector.load %arg1[%c1, %c0_2, %c0_3] : memref<2x8x128xf32, #tpu.memory_space<vmem>>, vector<1x8x128xf32>
    %3 = vector.shape_cast %2 : vector<1x8x128xf32> to vector<8x128xf32>
    %c0_4 = arith.constant 0 : index
    %c0_5 = arith.constant 0 : index
    %4 = memref.load %arg2[%c0_4, %c0_5] : memref<6x2xf32, #tpu.memory_space<smem>>
    %5 = vector.broadcast %4 : f32 to vector<8x128xf32>
    %6 = arith.mulf %1, %5 : vector<8x128xf32>
    %c0_6 = arith.constant 0 : index
    %7 = memref.load %arg3[%c0_6] : memref<6xf32, #tpu.memory_space<smem>>
    %8 = vector.broadcast %7 : f32 to vector<8x128xf32>
    %9 = arith.addf %6, %8 : vector<8x128xf32>
    %c0_7 = arith.constant 0 : index
    %c1_8 = arith.constant 1 : index
    %10 = memref.load %arg2[%c0_7, %c1_8] : memref<6x2xf32, #tpu.memory_space<smem>>
    %11 = vector.broadcast %10 : f32 to vector<8x128xf32>
    %12 = arith.mulf %3, %11 : vector<8x128xf32>
    %13 = arith.addf %9, %12 : vector<8x128xf32>
    %cst = arith.constant 0.000000e+00 : f32
    %14 = vector.broadcast %cst : f32 to vector<8x128xf32>
    %15 = arith.maximumf %13, %14 : vector<8x128xf32>
    %c1_9 = arith.constant 1 : index
    %c0_10 = arith.constant 0 : index
    %16 = memref.load %arg2[%c1_9, %c0_10] : memref<6x2xf32, #tpu.memory_space<smem>>
    %17 = vector.broadcast %16 : f32 to vector<8x128xf32>
    %18 = arith.mulf %1, %17 : vector<8x128xf32>
    %c1_11 = arith.constant 1 : index
    %19 = memref.load %arg3[%c1_11] : memref<6xf32, #tpu.memory_space<smem>>
    %20 = vector.broadcast %19 : f32 to vector<8x128xf32>
    %21 = arith.addf %18, %20 : vector<8x128xf32>
    %c1_12 = arith.constant 1 : index
    %c1_13 = arith.constant 1 : index
    %22 = memref.load %arg2[%c1_12, %c1_13] : memref<6x2xf32, #tpu.memory_space<smem>>
    %23 = vector.broadcast %22 : f32 to vector<8x128xf32>
    %24 = arith.mulf %3, %23 : vector<8x128xf32>
    %25 = arith.addf %21, %24 : vector<8x128xf32>
    %cst_14 = arith.constant 0.000000e+00 : f32
    %26 = vector.broadcast %cst_14 : f32 to vector<8x128xf32>
    %27 = arith.maximumf %25, %26 : vector<8x128xf32>
    %c2 = arith.constant 2 : index
    %c0_15 = arith.constant 0 : index
    %28 = memref.load %arg2[%c2, %c0_15] : memref<6x2xf32, #tpu.memory_space<smem>>
    %29 = vector.broadcast %28 : f32 to vector<8x128xf32>
    %30 = arith.mulf %1, %29 : vector<8x128xf32>
    %c2_16 = arith.constant 2 : index
    %31 = memref.load %arg3[%c2_16] : memref<6xf32, #tpu.memory_space<smem>>
    %32 = vector.broadcast %31 : f32 to vector<8x128xf32>
    %33 = arith.addf %30, %32 : vector<8x128xf32>
    %c2_17 = arith.constant 2 : index
    %c1_18 = arith.constant 1 : index
    %34 = memref.load %arg2[%c2_17, %c1_18] : memref<6x2xf32, #tpu.memory_space<smem>>
    %35 = vector.broadcast %34 : f32 to vector<8x128xf32>
    %36 = arith.mulf %3, %35 : vector<8x128xf32>
    %37 = arith.addf %33, %36 : vector<8x128xf32>
    %cst_19 = arith.constant 0.000000e+00 : f32
    %38 = vector.broadcast %cst_19 : f32 to vector<8x128xf32>
    %39 = arith.maximumf %37, %38 : vector<8x128xf32>
    %c3 = arith.constant 3 : index
    %c0_20 = arith.constant 0 : index
    %40 = memref.load %arg2[%c3, %c0_20] : memref<6x2xf32, #tpu.memory_space<smem>>
    %41 = vector.broadcast %40 : f32 to vector<8x128xf32>
    %42 = arith.mulf %1, %41 : vector<8x128xf32>
    %c3_21 = arith.constant 3 : index
    %43 = memref.load %arg3[%c3_21] : memref<6xf32, #tpu.memory_space<smem>>
    %44 = vector.broadcast %43 : f32 to vector<8x128xf32>
    %45 = arith.addf %42, %44 : vector<8x128xf32>
    %c3_22 = arith.constant 3 : index
    %c1_23 = arith.constant 1 : index
    %46 = memref.load %arg2[%c3_22, %c1_23] : memref<6x2xf32, #tpu.memory_space<smem>>
    %47 = vector.broadcast %46 : f32 to vector<8x128xf32>
    %48 = arith.mulf %3, %47 : vector<8x128xf32>
    %49 = arith.addf %45, %48 : vector<8x128xf32>
    %cst_24 = arith.constant 0.000000e+00 : f32
    %50 = vector.broadcast %cst_24 : f32 to vector<8x128xf32>
    %51 = arith.maximumf %49, %50 : vector<8x128xf32>
    %c4 = arith.constant 4 : index
    %c0_25 = arith.constant 0 : index
    %52 = memref.load %arg2[%c4, %c0_25] : memref<6x2xf32, #tpu.memory_space<smem>>
    %53 = vector.broadcast %52 : f32 to vector<8x128xf32>
    %54 = arith.mulf %1, %53 : vector<8x128xf32>
    %c4_26 = arith.constant 4 : index
    %55 = memref.load %arg3[%c4_26] : memref<6xf32, #tpu.memory_space<smem>>
    %56 = vector.broadcast %55 : f32 to vector<8x128xf32>
    %57 = arith.addf %54, %56 : vector<8x128xf32>
    %c4_27 = arith.constant 4 : index
    %c1_28 = arith.constant 1 : index
    %58 = memref.load %arg2[%c4_27, %c1_28] : memref<6x2xf32, #tpu.memory_space<smem>>
    %59 = vector.broadcast %58 : f32 to vector<8x128xf32>
    %60 = arith.mulf %3, %59 : vector<8x128xf32>
    %61 = arith.addf %57, %60 : vector<8x128xf32>
    %cst_29 = arith.constant 0.000000e+00 : f32
    %62 = vector.broadcast %cst_29 : f32 to vector<8x128xf32>
    %63 = arith.maximumf %61, %62 : vector<8x128xf32>
    %c5 = arith.constant 5 : index
    %c0_30 = arith.constant 0 : index
    %64 = memref.load %arg2[%c5, %c0_30] : memref<6x2xf32, #tpu.memory_space<smem>>
    %65 = vector.broadcast %64 : f32 to vector<8x128xf32>
    %66 = arith.mulf %1, %65 : vector<8x128xf32>
    %c5_31 = arith.constant 5 : index
    %67 = memref.load %arg3[%c5_31] : memref<6xf32, #tpu.memory_space<smem>>
    %68 = vector.broadcast %67 : f32 to vector<8x128xf32>
    %69 = arith.addf %66, %68 : vector<8x128xf32>
    %c5_32 = arith.constant 5 : index
    %c1_33 = arith.constant 1 : index
    %70 = memref.load %arg2[%c5_32, %c1_33] : memref<6x2xf32, #tpu.memory_space<smem>>
    %71 = vector.broadcast %70 : f32 to vector<8x128xf32>
    %72 = arith.mulf %3, %71 : vector<8x128xf32>
    %73 = arith.addf %69, %72 : vector<8x128xf32>
    %cst_34 = arith.constant 0.000000e+00 : f32
    %74 = vector.broadcast %cst_34 : f32 to vector<8x128xf32>
    %75 = arith.maximumf %73, %74 : vector<8x128xf32>
    %c0_35 = arith.constant 0 : index
    %c0_36 = arith.constant 0 : index
    %76 = memref.load %arg4[%c0_35, %c0_36] : memref<3x6xf32, #tpu.memory_space<smem>>
    %77 = vector.broadcast %76 : f32 to vector<8x128xf32>
    %78 = arith.mulf %15, %77 : vector<8x128xf32>
    %c0_37 = arith.constant 0 : index
    %79 = memref.load %arg5[%c0_37] : memref<3xf32, #tpu.memory_space<smem>>
    %80 = vector.broadcast %79 : f32 to vector<8x128xf32>
    %81 = arith.addf %78, %80 : vector<8x128xf32>
    %c0_38 = arith.constant 0 : index
    %c1_39 = arith.constant 1 : index
    %82 = memref.load %arg4[%c0_38, %c1_39] : memref<3x6xf32, #tpu.memory_space<smem>>
    %83 = vector.broadcast %82 : f32 to vector<8x128xf32>
    %84 = arith.mulf %27, %83 : vector<8x128xf32>
    %85 = arith.addf %81, %84 : vector<8x128xf32>
    %c0_40 = arith.constant 0 : index
    %c2_41 = arith.constant 2 : index
    %86 = memref.load %arg4[%c0_40, %c2_41] : memref<3x6xf32, #tpu.memory_space<smem>>
    %87 = vector.broadcast %86 : f32 to vector<8x128xf32>
    %88 = arith.mulf %39, %87 : vector<8x128xf32>
    %89 = arith.addf %85, %88 : vector<8x128xf32>
    %c0_42 = arith.constant 0 : index
    %c3_43 = arith.constant 3 : index
    %90 = memref.load %arg4[%c0_42, %c3_43] : memref<3x6xf32, #tpu.memory_space<smem>>
    %91 = vector.broadcast %90 : f32 to vector<8x128xf32>
    %92 = arith.mulf %51, %91 : vector<8x128xf32>
    %93 = arith.addf %89, %92 : vector<8x128xf32>
    %c0_44 = arith.constant 0 : index
    %c4_45 = arith.constant 4 : index
    %94 = memref.load %arg4[%c0_44, %c4_45] : memref<3x6xf32, #tpu.memory_space<smem>>
    %95 = vector.broadcast %94 : f32 to vector<8x128xf32>
    %96 = arith.mulf %63, %95 : vector<8x128xf32>
    %97 = arith.addf %93, %96 : vector<8x128xf32>
    %c0_46 = arith.constant 0 : index
    %c5_47 = arith.constant 5 : index
    %98 = memref.load %arg4[%c0_46, %c5_47] : memref<3x6xf32, #tpu.memory_space<smem>>
    %99 = vector.broadcast %98 : f32 to vector<8x128xf32>
    %100 = arith.mulf %75, %99 : vector<8x128xf32>
    %101 = arith.addf %97, %100 : vector<8x128xf32>
    %c1_48 = arith.constant 1 : index
    %c0_49 = arith.constant 0 : index
    %102 = memref.load %arg4[%c1_48, %c0_49] : memref<3x6xf32, #tpu.memory_space<smem>>
    %103 = vector.broadcast %102 : f32 to vector<8x128xf32>
    %104 = arith.mulf %15, %103 : vector<8x128xf32>
    %c1_50 = arith.constant 1 : index
    %105 = memref.load %arg5[%c1_50] : memref<3xf32, #tpu.memory_space<smem>>
    %106 = vector.broadcast %105 : f32 to vector<8x128xf32>
    %107 = arith.addf %104, %106 : vector<8x128xf32>
    %c1_51 = arith.constant 1 : index
    %c1_52 = arith.constant 1 : index
    %108 = memref.load %arg4[%c1_51, %c1_52] : memref<3x6xf32, #tpu.memory_space<smem>>
    %109 = vector.broadcast %108 : f32 to vector<8x128xf32>
    %110 = arith.mulf %27, %109 : vector<8x128xf32>
    %111 = arith.addf %107, %110 : vector<8x128xf32>
    %c1_53 = arith.constant 1 : index
    %c2_54 = arith.constant 2 : index
    %112 = memref.load %arg4[%c1_53, %c2_54] : memref<3x6xf32, #tpu.memory_space<smem>>
    %113 = vector.broadcast %112 : f32 to vector<8x128xf32>
    %114 = arith.mulf %39, %113 : vector<8x128xf32>
    %115 = arith.addf %111, %114 : vector<8x128xf32>
    %c1_55 = arith.constant 1 : index
    %c3_56 = arith.constant 3 : index
    %116 = memref.load %arg4[%c1_55, %c3_56] : memref<3x6xf32, #tpu.memory_space<smem>>
    %117 = vector.broadcast %116 : f32 to vector<8x128xf32>
    %118 = arith.mulf %51, %117 : vector<8x128xf32>
    %119 = arith.addf %115, %118 : vector<8x128xf32>
    %c1_57 = arith.constant 1 : index
    %c4_58 = arith.constant 4 : index
    %120 = memref.load %arg4[%c1_57, %c4_58] : memref<3x6xf32, #tpu.memory_space<smem>>
    %121 = vector.broadcast %120 : f32 to vector<8x128xf32>
    %122 = arith.mulf %63, %121 : vector<8x128xf32>
    %123 = arith.addf %119, %122 : vector<8x128xf32>
    %c1_59 = arith.constant 1 : index
    %c5_60 = arith.constant 5 : index
    %124 = memref.load %arg4[%c1_59, %c5_60] : memref<3x6xf32, #tpu.memory_space<smem>>
    %125 = vector.broadcast %124 : f32 to vector<8x128xf32>
    %126 = arith.mulf %75, %125 : vector<8x128xf32>
    %127 = arith.addf %123, %126 : vector<8x128xf32>
    %c2_61 = arith.constant 2 : index
    %c0_62 = arith.constant 0 : index
    %128 = memref.load %arg4[%c2_61, %c0_62] : memref<3x6xf32, #tpu.memory_space<smem>>
    %129 = vector.broadcast %128 : f32 to vector<8x128xf32>
    %130 = arith.mulf %15, %129 : vector<8x128xf32>
    %c2_63 = arith.constant 2 : index
    %131 = memref.load %arg5[%c2_63] : memref<3xf32, #tpu.memory_space<smem>>
    %132 = vector.broadcast %131 : f32 to vector<8x128xf32>
    %133 = arith.addf %130, %132 : vector<8x128xf32>
    %c2_64 = arith.constant 2 : index
    %c1_65 = arith.constant 1 : index
    %134 = memref.load %arg4[%c2_64, %c1_65] : memref<3x6xf32, #tpu.memory_space<smem>>
    %135 = vector.broadcast %134 : f32 to vector<8x128xf32>
    %136 = arith.mulf %27, %135 : vector<8x128xf32>
    %137 = arith.addf %133, %136 : vector<8x128xf32>
    %c2_66 = arith.constant 2 : index
    %c2_67 = arith.constant 2 : index
    %138 = memref.load %arg4[%c2_66, %c2_67] : memref<3x6xf32, #tpu.memory_space<smem>>
    %139 = vector.broadcast %138 : f32 to vector<8x128xf32>
    %140 = arith.mulf %39, %139 : vector<8x128xf32>
    %141 = arith.addf %137, %140 : vector<8x128xf32>
    %c2_68 = arith.constant 2 : index
    %c3_69 = arith.constant 3 : index
    %142 = memref.load %arg4[%c2_68, %c3_69] : memref<3x6xf32, #tpu.memory_space<smem>>
    %143 = vector.broadcast %142 : f32 to vector<8x128xf32>
    %144 = arith.mulf %51, %143 : vector<8x128xf32>
    %145 = arith.addf %141, %144 : vector<8x128xf32>
    %c2_70 = arith.constant 2 : index
    %c4_71 = arith.constant 4 : index
    %146 = memref.load %arg4[%c2_70, %c4_71] : memref<3x6xf32, #tpu.memory_space<smem>>
    %147 = vector.broadcast %146 : f32 to vector<8x128xf32>
    %148 = arith.mulf %63, %147 : vector<8x128xf32>
    %149 = arith.addf %145, %148 : vector<8x128xf32>
    %c2_72 = arith.constant 2 : index
    %c5_73 = arith.constant 5 : index
    %150 = memref.load %arg4[%c2_72, %c5_73] : memref<3x6xf32, #tpu.memory_space<smem>>
    %151 = vector.broadcast %150 : f32 to vector<8x128xf32>
    %152 = arith.mulf %75, %151 : vector<8x128xf32>
    %153 = arith.addf %149, %152 : vector<8x128xf32>
    %154 = arith.maximumf %101, %127 : vector<8x128xf32>
    %155 = arith.maximumf %154, %153 : vector<8x128xf32>
    %156 = arith.subf %101, %155 : vector<8x128xf32>
    %157 = math.exp %156 : vector<8x128xf32>
    %158 = arith.subf %127, %155 : vector<8x128xf32>
    %159 = math.exp %158 : vector<8x128xf32>
    %160 = arith.subf %153, %155 : vector<8x128xf32>
    %161 = math.exp %160 : vector<8x128xf32>
    %162 = arith.addf %157, %159 : vector<8x128xf32>
    %163 = arith.addf %162, %161 : vector<8x128xf32>
    %164 = tpu.reciprocal %163 {approx = true} : vector<8x128xf32> -> vector<8x128xf32>
    %165 = arith.mulf %157, %164 : vector<8x128xf32>
    %c0_74 = arith.constant 0 : index
    %c0_75 = arith.constant 0 : index
    %c0_76 = arith.constant 0 : index
    %166 = vector.load %arg6[%c0_74, %c0_75, %c0_76] : memref<3x8x128xf32, #tpu.memory_space<vmem>>, vector<1x8x128xf32>
    %167 = vector.shape_cast %166 : vector<1x8x128xf32> to vector<8x128xf32>
    %168 = vector.shape_cast %165 : vector<8x128xf32> to vector<1x8x128xf32>
    tpu.vector_store %arg6[%c0_74, %c0_75, %c0_76], %168 {strides = array<i32>} : memref<3x8x128xf32, #tpu.memory_space<vmem>>, vector<1x8x128xf32>,
    %169 = arith.mulf %159, %164 : vector<8x128xf32>
    %c1_77 = arith.constant 1 : index
    %c0_78 = arith.constant 0 : index
    %c0_79 = arith.constant 0 : index
    %170 = vector.load %arg6[%c1_77, %c0_78, %c0_79] : memref<3x8x128xf32, #tpu.memory_space<vmem>>, vector<1x8x128xf32>
    %171 = vector.shape_cast %170 : vector<1x8x128xf32> to vector<8x128xf32>
    %172 = vector.shape_cast %169 : vector<8x128xf32> to vector<1x8x128xf32>
    tpu.vector_store %arg6[%c1_77, %c0_78, %c0_79], %172 {strides = array<i32>} : memref<3x8x128xf32, #tpu.memory_space<vmem>>, vector<1x8x128xf32>,
    %173 = arith.mulf %161, %164 : vector<8x128xf32>
    %c2_80 = arith.constant 2 : index
    %c0_81 = arith.constant 0 : index
    %c0_82 = arith.constant 0 : index
    %174 = vector.load %arg6[%c2_80, %c0_81, %c0_82] : memref<3x8x128xf32, #tpu.memory_space<vmem>>, vector<1x8x128xf32>
    %175 = vector.shape_cast %174 : vector<1x8x128xf32> to vector<8x128xf32>
    %176 = vector.shape_cast %173 : vector<8x128xf32> to vector<1x8x128xf32>
    tpu.vector_store %arg6[%c2_80, %c0_81, %c0_82], %176 {strides = array<i32>} : memref<3x8x128xf32, #tpu.memory_space<vmem>>, vector<1x8x128xf32>,
    return
  }
  func.func @transform_0(%arg0: i32) -> (i32, i32, i32) {
    %c0_i32 = arith.constant 0 : i32
    %c0_i32_0 = arith.constant 0 : i32
    %c0_i32_1 = arith.constant 0 : i32
    return %c0_i32, %arg0, %c0_i32_0 : i32, i32, i32
  }
  func.func @transform_1(%arg0: i32) -> (i32, i32) {
    %c0_i32 = arith.constant 0 : i32
    %c0_i32_0 = arith.constant 0 : i32
    %c0_i32_1 = arith.constant 0 : i32
    return %c0_i32, %c0_i32_0 : i32, i32
  }
  func.func @transform_2(%arg0: i32) -> i32 {
    %c0_i32 = arith.constant 0 : i32
    %c0_i32_0 = arith.constant 0 : i32
    return %c0_i32 : i32
  }
  func.func @transform_3(%arg0: i32) -> (i32, i32) {
    %c0_i32 = arith.constant 0 : i32
    %c0_i32_0 = arith.constant 0 : i32
    %c0_i32_1 = arith.constant 0 : i32
    return %c0_i32, %c0_i32_0 : i32, i32
  }
  func.func @transform_4(%arg0: i32) -> i32 {
    %c0_i32 = arith.constant 0 : i32
    %c0_i32_0 = arith.constant 0 : i32
    return %c0_i32 : i32
  }
  func.func @transform_5(%arg0: i32) -> (i32, i32, i32) {
    %c0_i32 = arith.constant 0 : i32
    %c0_i32_0 = arith.constant 0 : i32
    %c0_i32_1 = arith.constant 0 : i32
    return %c0_i32, %arg0, %c0_i32_0 : i32, i32, i32
  }
}

</mosaic_0001>

<bundles_post_ra>
// kernel: gina_forward.1
= control target key start
LH: loop header
LB: loop body
LE: loop exit
PB: predicated region body
PF: predicated region fallthrough
CT: control target
= control target key end

     0   :  { %10 = vsyncpa [#allocation3], 0  ;;  %s523_s0 = inlined_call_operand.vmem [shape: f32[2,8,128], index: 0, kind: input, shape index: {}]   ;;  %s524_s1 = inlined_call_operand.vmem [shape: f32[6,2], index: 1, kind: input, shape index: {}]   ;;  %s525_s2 = inlined_call_operand.vmem [shape: f32[6], index: 2, kind: input, shape index: {}]   ;;  %s526_s3 = inlined_call_operand.vmem [shape: f32[3,6], index: 3, kind: input, shape index: {}]   ;;  %s527_s4 = inlined_call_operand.vmem [shape: f32[3], index: 4, kind: input, shape index: {}]   ;;  %s528_s5 = inlined_call_operand.vmem [shape: f32[3,8,128], index: 5, kind: output, shape index: {}]  }
   0x1   :  { %11 = vsyncpa [#allocation5], 0  ;;  %s31_s20 = sshll.u32 %s525_s2, 4  ;;  %s32_s20 = int_to_ptr.vmem [resolvable:$true] %s31_s20 }
   0x2   :  { %12 = vsyncpa [#allocation8], 0  ;;  %s21_s23 = sshll.u32 %s524_s1, 4  ;;  %s294_s24 = scalar_lea.vmem %s32_s20, 16  ;;  %s22_s23 = int_to_ptr.vmem [resolvable:$true] %s21_s23 }
   0x3   :  { %p295_p0 = scmp.ne.s32.totalorder %s32_s20, %s294_s24  ;;  %p299_p1 = scmp.lt.s32.totalorder %s32_s20, %s32_s20 }
   0x4   :  { %p300_p2 = scmp.lt.s32.totalorder %s294_s24, %s294_s24 }
   0x6   :  { %p301_p3 = por %p300_p2, %p299_p1 }
   0x8   :  { %p302_p4 = pnand %p301_p3, %p295_p0 }
   0xa   :  { %305 = shalt.err (!%p302_p4)
}
   0xb   :  { %s348_s25 = smov [#allocation4]   ;;  %s306_s26 = scalar_lea.vmem %s22_s23, 128 }
   0xc   :  { %34 = dma.vmem_to_smem %s32_s20, 16, %s348_s25, [#allocation5]  }
   0xd   :  { %p307_p5 = scmp.ne.s32.totalorder %s22_s23, %s306_s26  ;;  %p311_p6 = scmp.lt.s32.totalorder %s22_s23, %s22_s23 }
   0xe   :  { %p312_p7 = scmp.lt.s32.totalorder %s306_s26, %s306_s26 }
  0x10   :  { %p313_p8 = por %p312_p7, %p311_p6 }
  0x12   :  { %p314_p9 = pnand %p313_p8, %p307_p5 }
  0x14   :  { %317 = shalt.err (!%p314_p9)
}
  0x15   :  { %s349_s2 = smov [#allocation2]   ;;  %s41_s28 = sshll.u32 %s526_s3, 4  ;;  %s42_s28 = int_to_ptr.vmem [resolvable:$true] %s41_s28 }
  0x16   :  { %24 = dma.vmem_to_smem %s22_s23, 128, %s349_s2, [#allocation3]  }
  0x17   :  { %s51_s6 = sshll.u32 %s527_s4, 4  ;;  %s318_s7 = scalar_lea.vmem %s42_s28, 64  ;;  %s52_s6 = int_to_ptr.vmem [resolvable:$true] %s51_s6 }
  0x18   :  { %p319_p10 = scmp.ne.s32.totalorder %s42_s28, %s318_s7  ;;  %p323_p11 = scmp.lt.s32.totalorder %s42_s28, %s42_s28 }
  0x19   :  { %p324_p12 = scmp.lt.s32.totalorder %s318_s7, %s318_s7 }
  0x1b   :  { %p325_p13 = por %p324_p12, %p323_p11 }
  0x1d   :  { %p326_p0 = pnand %p325_p13, %p319_p10 }
  0x1f   :  { %329 = shalt.err (!%p326_p0)
}
  0x20   :  { %s350_s8 = smov [#allocation6]   ;;  %s330_s9 = scalar_lea.vmem %s52_s6, 16 }
  0x21   :  { %44 = dma.vmem_to_smem %s42_s28, 64, %s350_s8, [#allocation5]  }
  0x22   :  { %p331_p1 = scmp.ne.s32.totalorder %s52_s6, %s330_s9  ;;  %p335_p2 = scmp.lt.s32.totalorder %s52_s6, %s52_s6 }
  0x23   :  { %p336_p3 = scmp.lt.s32.totalorder %s330_s9, %s330_s9 }
  0x25   :  { %p337_p4 = por %p336_p3, %p335_p2 }
  0x27   :  { %p338_p5 = pnand %p337_p4, %p331_p1 }
  0x29   :  { %341 = shalt.err (!%p338_p5)
}
  0x2a   :  { %s351_s3 = smov [#allocation7]  }
  0x2b   :  { %54 = dma.vmem_to_smem %s52_s6, 16, %s351_s3, [#allocation8]  }
  0x2c   :  { %342 = dma.done.wait [#allocation3], 128  }
  0x2d   :  { %343 = vsyncadd [#allocation3], 4294967168 }
  0x2e   :  { %344 = dma.done.wait [#allocation5], 80  }
  0x2f   :  { %345 = vsyncadd [#allocation5], 4294967216 }
  0x30   :  { %346 = dma.done.wait [#allocation8], 16  }
  0x31   :  { %347 = vsyncadd [#allocation8], 4294967280 }
  0x32   :  { %67 = sfence }
  0x33   :  { %s71_s4 = sld [smem:[#allocation2]]  ;;  %s245_s11 = sld [smem:[#allocation2 + $0x1]]  ;;  %v68_v0 = vld [vmem:[%s523_s0] sm:$0xff]  ;;  %v406_v1 = vld [vmem:[%s523_s0 + $0x8] sm:$0xff] }
  0x34   :  { %s74_s10 = sld [smem:[#allocation4]]  ;;  %s247_s13 = sld [smem:[#allocation4 + $0x1]] }
  0x35   :  { %s246_s12 = sld [smem:[#allocation2 + $0x80]]  ;;  %s248_s14 = sld [smem:[#allocation2 + $0x81]] }
  0x36   :  { %s249_s15 = sld [smem:[#allocation2 + $0x100]]  ;;  %s394_s16 = sld [smem:[#allocation4 + $0x2]] }
  0x37   :  { %s399_s19 = sld [smem:[#allocation2 + $0x101]]  ;;  %s401_s20 = sld [smem:[#allocation2 + $0x180]] }
  0x38   :  { %s408_s23 = sld [smem:[#allocation4 + $0x3]]  ;;  %s410_s24 = sld [smem:[#allocation2 + $0x181]] }
  0x39   :  { %v72_v2 = vstv %s71_s4  ;;  %s412_s25 = sld [smem:[#allocation2 + $0x200]]  ;;  %s414_s26 = sld [smem:[#allocation4 + $0x4]]  ;;  %v78_v5 = vstv %s245_s11 }
  0x3a   :  { %v75_v3 = vstv %s74_s10  ;;  %v73_v4 = vmul.f32 %v72_v2, %v68_v0  ;;  %s416_s2 = sld [smem:[#allocation2 + $0x201]]  ;;  %s418_s0 = sld [smem:[#allocation2 + $0x280]]  ;;  %v79_v7 = vmul.f32 %v406_v1, %v78_v5  ;;  %v86_v9 = vstv %s247_s13 }
  0x3b   :  { %v83_v6 = vstv %s246_s12  ;;  %v89_v10 = vstv %s248_s14  ;;  %s421_s1 = sld [smem:[#allocation4 + $0x5]]  ;;  %s423_s27 = sld [smem:[#allocation2 + $0x281]] }
  0x3c   :  { %v84_v8 = vmul.f32 %v83_v6, %v68_v0  ;;  %v76_v11 = vadd.f32 %v75_v3, %v73_v4  ;;  %v90_v12 = vmul.f32 %v406_v1, %v89_v10  ;;  %v94_v13 = vstv %s249_s15  ;;  %s427_s28 = sld [smem:[#allocation6]]  ;;  %s433_s30 = sld [smem:[#allocation6 + $0x1]] }
  0x3d   :  { %v97_v14 = vstv %s394_s16  ;;  %v95_v16 = vmul.f32 %v94_v13, %v68_v0  ;;  %v100_v17 = vstv %s399_s19  ;;  %v105_v18 = vstv %s401_s20  ;;  %s431_s29 = sld [smem:[#allocation7]]  ;;  %s437_s6 = sld [smem:[#allocation6 + $0x2]] }
  0x3e   :  { %v87_v15 = vadd.f32 %v86_v9, %v84_v8  ;;  %v80_v19 = vadd.f32 %v79_v7, %v76_v11  ;;  %v101_v20 = vmul.f32 %v406_v1, %v100_v17  ;;  %v106_v21 = vmul.f32 %v105_v18, %v68_v0  ;;  %s439_s7 = sld [smem:[#allocation6 + $0x3]]  ;;  %s443_s8 = sld [smem:[#allocation6 + $0x4]] }
  0x3f   :  { %v108_v22 = vstv %s408_s23  ;;  %v98_v24 = vadd.f32 %v97_v14, %v95_v16  ;;  %v111_v25 = vstv %s410_s24  ;;  %v116_v26 = vstv %s412_s25  ;;  %s448_s9 = sld [smem:[#allocation6 + $0x80]]  ;;  %s450_s3 = sld [smem:[#allocation7 + $0x1]] }
  0x40   :  { %v91_v23 = vadd.f32 %v90_v12, %v87_v15  ;;  %v445_v27 = vmax.f32 %v80_v19, 0.0  ;;  %v109_v28 = vadd.f32 %v108_v22, %v106_v21  ;;  %v112_v29 = vmul.f32 %v406_v1, %v111_v25  ;;  %s456_s4 = sld [smem:[#allocation6 + $0x5]]  ;;  %s458_s10 = sld [smem:[#allocation6 + $0x81]] }
  0x41   :  { %v117_v30 = vmul.f32 %v116_v26, %v68_v0  ;;  %v102_v32 = vadd.f32 %v101_v20, %v98_v24  ;;  %v119_v33 = vstv %s414_s26  ;;  %v122_v34 = vstv %s416_s2  ;;  %s462_s11 = sld [smem:[#allocation6 + $0x82]]  ;;  %s464_s12 = sld [smem:[#allocation6 + $0x83]] }
  0x42   :  { %v452_v31 = vmax.f32 %v91_v23, 0.0  ;;  %v113_v35 = vadd.f32 %v112_v29, %v109_v28  ;;  %v123_v37 = vmul.f32 %v406_v1, %v122_v34  ;;  %v127_v38 = vstv %s418_s0  ;;  %s470_s13 = sld [smem:[#allocation6 + $0x84]]  ;;  %s472_s14 = sld [smem:[#allocation6 + $0x85]] }
  0x43   :  { %v120_v36 = vadd.f32 %v119_v33, %v117_v30  ;;  %v103_v39 = vmax.f32 %v102_v32, 0.0  ;;  %v128_v40 = vmul.f32 %v127_v38, %v68_v0  ;;  %v130_v41 = vstv %s421_s1  ;;  %s477_s15 = sld [smem:[#allocation6 + $0x100]]  ;;  %s479_s16 = sld [smem:[#allocation7 + $0x2]] }
  0x44   :  { %v133_v42 = vstv %s423_s27  ;;  %v114_v43 = vmax.f32 %v113_v35, 0.0  ;;  %v138_v46 = vstv %s427_s28  ;;  %v141_v49 = vstv %s431_s29  ;;  %s484_s17 = sld [smem:[#allocation6 + $0x101]]  ;;  %s486_s18 = sld [smem:[#allocation6 + $0x102]] }
  0x45   :  { %v124_v44 = vadd.f32 %v123_v37, %v120_v36  ;;  %v134_v45 = vmul.f32 %v406_v1, %v133_v42  ;;  %v131_v47 = vadd.f32 %v130_v41, %v128_v40  ;;  %v139_v48 = vmul.f32 %v138_v46, %v445_v27  ;;  %s490_s19 = sld [smem:[#allocation6 + $0x103]]  ;;  %s494_s20 = sld [smem:[#allocation6 + $0x104]] }
  0x46   :  { %v144_v50 = vstv %s433_s30  ;;  %v148_v52 = vstv %s437_s6  ;;  %v152_v53 = vstv %s439_s7  ;;  %v164_v58 = vstv %s448_s9  ;;  %s501_s21 = sld [smem:[#allocation6 + $0x105]] }
  0x47   :  { %v145_v51 = vmul.f32 %v144_v50, %v452_v31  ;;  %v135_v54 = vadd.f32 %v134_v45, %v131_v47  ;;  %v142_v55 = vadd.f32 %v141_v49, %v139_v48  ;;  %v149_v56 = vmul.f32 %v148_v52, %v103_v39 }
  0x48   :  { %v125_v57 = vmax.f32 %v124_v44, 0.0  ;;  %v167_v59 = vstv %s450_s3  ;;  %v153_v61 = vmul.f32 %v152_v53, %v114_v43  ;;  %v156_v62 = vstv %s443_s8 }
  0x49   :  { %v146_v60 = vadd.f32 %v145_v51, %v142_v55  ;;  %v165_v63 = vmul.f32 %v164_v58, %v445_v27  ;;  %v160_v0 = vstv %s456_s4  ;;  %v170_v1 = vstv %s458_s10 }
  0x4a   :  { %v174_v2 = vstv %s462_s11  ;;  %v178_v3 = vstv %s464_s12  ;;  %v136_v4 = vmax.f32 %v135_v54, 0.0  ;;  %v171_v7 = vmul.f32 %v170_v1, %v452_v31 }
  0x4b   :  { %v150_v5 = vadd.f32 %v149_v56, %v146_v60  ;;  %v168_v6 = vadd.f32 %v167_v59, %v165_v63  ;;  %v157_v8 = vmul.f32 %v156_v62, %v125_v57  ;;  %v175_v9 = vmul.f32 %v174_v2, %v103_v39 }
  0x4c   :  { %v179_v10 = vmul.f32 %v178_v3, %v114_v43  ;;  %v182_v11 = vstv %s470_s13  ;;  %v186_v14 = vstv %s472_s14  ;;  %v190_v15 = vstv %s477_s15 }
  0x4d   :  { %v154_v12 = vadd.f32 %v153_v61, %v150_v5  ;;  %v172_v13 = vadd.f32 %v171_v7, %v168_v6  ;;  %v191_v16 = vmul.f32 %v190_v15, %v445_v27  ;;  %v193_v17 = vstv %s479_s16 }
  0x4e   :  { %v196_v18 = vstv %s484_s17  ;;  %v200_v19 = vstv %s486_s18  ;;  %v161_v20 = vmul.f32 %v160_v0, %v136_v4  ;;  %v183_v22 = vmul.f32 %v182_v11, %v125_v57 }
  0x4f   :  { %v176_v21 = vadd.f32 %v175_v9, %v172_v13  ;;  %v197_v23 = vmul.f32 %v196_v18, %v452_v31  ;;  %v158_v24 = vadd.f32 %v157_v8, %v154_v12  ;;  %v194_v25 = vadd.f32 %v193_v17, %v191_v16 }
  0x50   :  { %v201_v26 = vmul.f32 %v200_v19, %v103_v39  ;;  %v204_v28 = vstv %s490_s19  ;;  %v187_v30 = vmul.f32 %v186_v14, %v136_v4  ;;  %v208_v32 = vstv %s494_s20 }
  0x51   :  { %v180_v29 = vadd.f32 %v179_v10, %v176_v21  ;;  %v198_v33 = vadd.f32 %v197_v23, %v194_v25  ;;  %v205_v34 = vmul.f32 %v204_v28, %v114_v43  ;;  %v212_v27 = vstv %s501_s21 }
  0x52   :  { %v162_v36 = vadd.f32 %v161_v20, %v158_v24  ;;  %v209_v38 = vmul.f32 %v208_v32, %v125_v57  ;;  %v213_v42 = vmul.f32 %v212_v27, %v136_v4 }
  0x53   :  { %v184_v35 = vadd.f32 %v183_v22, %v180_v29  ;;  %v202_v37 = vadd.f32 %v201_v26, %v198_v33 }
  0x55   :  { %v188_v40 = vadd.f32 %v187_v30, %v184_v35  ;;  %v206_v41 = vadd.f32 %v205_v34, %v202_v37 }
  0x57   :  { %v210_v44 = vadd.f32 %v209_v38, %v206_v41  ;;  %v215_v45 = vmax.f32 %v162_v36, %v188_v40 }
  0x59   :  { %v214_v31 = vadd.f32 %v213_v42, %v210_v44 }
  0x5b   :  { %v216_v46 = vmax.f32 %v215_v45, %v214_v31 }
  0x5d   :  { %v217_v47 = vsub.f32 %v162_v36, %v216_v46  ;;  %v220_v39 = vsub.f32 %v188_v40, %v216_v46  ;;  %v223_v48 = vsub.f32 %v214_v31, %v216_v46 }
  0x5f   :  { %v218_v49 = vmul.f32 1.442695, %v217_v47  ;;  %v221_v50 = vmul.f32 1.442695, %v220_v39  ;;  %v224_v51 = vmul.f32 1.442695, %v223_v48 }
  0x61   :  { %286 = vpow2.f32 %v218_v49 }
  0x62   :  { %288 = vpow2.f32 %v221_v50 }
  0x63   :  { %290 = vpow2.f32 %v224_v51 }
  0x6b   :  { %v287_v43 = vpop.eup %286 }
  0x6c   :  { %v289_v52 = vpop.eup %288 }
  0x6d   :  { %v291_v53 = vpop.eup %290  ;;  %v226_v54 = vadd.f32 %v289_v52, %v287_v43 }
  0x6f   :  { %v227_v55 = vadd.f32 %v291_v53, %v226_v54 }
  0x71   :  { %292 = vrcp.f32 %v227_v55 }
  0x7b   :  { %v293_v56 = vpop.eup %292 }
  0x7c   :  { %v229_v57 = vmul.f32 %v293_v56, %v287_v43  ;;  %v231_v58 = vmul.f32 %v293_v56, %v289_v52  ;;  %v234_v59 = vmul.f32 %v293_v56, %v291_v53 }
  0x7e   :  { %230 = vst [vmem:[%s528_s5] sm:$0xff] %v229_v57  ;;  %280 = vst [vmem:[%s528_s5 + $0x8] sm:$0xff] %v231_v58 }
  0x7f   :  { %281 = vst [vmem:[%s528_s5 + $0x10] sm:$0xff] %v234_v59 }
  0x80   :  { %241 = vsyncpa [#allocation3], 1 }
  0x81   :  { %242 = vsyncpa [#allocation5], 1 }
  0x82   :  { %243 = vsyncpa [#allocation8], 1 }

</bundles_post_ra>
